<compile_context>
chip_gen: v6e
topology: v6e:2x2x1
jax: 0.10.0
libtpu: 0.0.40
codegen_flags: <defaults>
</compile_context>

<pallas_src>
import math
import functools

import jax
import jax.numpy as jnp
from jax import lax
from jax.experimental import pallas as pl
from jax.experimental.pallas import tpu as pltpu


def _round_up(x, m):
    return (x + m - 1) // m * m


# ----------------------------------------------------------------------------
# Fused conv3x3(s2, p1) + folded-BN + GELU Pallas kernel (one matmul per step)
# ----------------------------------------------------------------------------
def _stem_conv_kernel(p_ee_ref, p_eo_ref, p_oe_ref, p_oo_ref, w_ref, shift_ref,
                      o_ref, *, Wp, L):
    """One (batch, Cout-block) grid step.

    p_??_ref  : (1, Cin_p, Lp) flattened parity planes of the zero-padded
                input (even/odd rows x even/odd cols), bf16.  Flat index
                r*Wp + c corresponds to plane position (r, c).
    w_ref     : (Cout_blk, 9*Cin_p) conv weights * BN scale, bf16,
                columns ordered (ky, kx, cin).
    shift_ref : (Cout_blk, 1) folded BN shift, f32.
    o_ref     : (1, Cout_blk, L) lane-dense output slab; lane j = h*Wp + w is
                output pixel (h, w) for w < Wo (w == Wo lanes are junk and are
                dropped by the wrapper).
    """
    # (ky, kx) tap -> (parity plane, flat lane offset dy*Wp + dx), in (ky, kx)
    # order to match the weight flattening.
    taps = ((p_ee_ref, 0), (p_eo_ref, 0), (p_ee_ref, 1),
            (p_oe_ref, 0), (p_oo_ref, 0), (p_oe_ref, 1),
            (p_ee_ref, Wp), (p_eo_ref, Wp), (p_ee_ref, Wp + 1))

    # Each piece is a contiguous (Cin_p, L) lane slice (static offset).
    pieces = [ref[0, :, pl.ds(off, L)] for (ref, off) in taps]
    rhs = jnp.concatenate(pieces, axis=0)                 # (9*Cin_p, L), bf16

    acc = jnp.dot(w_ref[...], rhs,
                  preferred_element_type=jnp.float32)     # (Cout_blk, L), f32
    y = acc + shift_ref[...]                              # folded BN shift
    # tanh-approx GELU runs on the EUP; torch default is exact erf (see notes).
    y = jax.nn.gelu(y, approximate=True)
    o_ref[0, :, :] = y.astype(o_ref.dtype)


def _stage_pallas(planes, w_flat, shift, *, Wp, L, out_dtype):
    """planes: 4 flat parity planes [N, Cin_p, Lp] -> output [N, Cout, L]."""
    N, Cin_p, Lp = planes[0].shape
    Cout, K = w_flat.shape

    # Split Cout across two grid steps when cleanly divisible: keeps both v7x
    # TensorCores busy even at N == 1; negligible overhead on v5e/v6e.
    ncb = 2 if (Cout % 16 == 0) else 1
    cb = Cout // ncb

    plane_spec = pl.BlockSpec((1, Cin_p, Lp), lambda n, c: (n, 0, 0))

    bytes_accessed = (4 * N * Cin_p * Lp * 2          # bf16 parity planes
                      + Cout * K * 2                  # bf16 weights
                      + Cout * 4                      # f32 shift
                      + N * Cout * L * jnp.dtype(out_dtype).itemsize)

    return pl.pallas_call(
        functools.partial(_stem_conv_kernel, Wp=Wp, L=L),
        out_shape=jax.ShapeDtypeStruct((N, Cout, L), out_dtype),
        grid_spec=pltpu.PrefetchScalarGridSpec(
            num_scalar_prefetch=0,
            grid=(N, ncb),
            in_specs=[plane_spec, plane_spec, plane_spec, plane_spec,
                      pl.BlockSpec((cb, K), lambda n, c: (c, 0)),
                      pl.BlockSpec((cb, 1), lambda n, c: (c, 0))],
            out_specs=pl.BlockSpec((1, cb, L), lambda n, c: (n, c, 0)),
        ),
        compiler_params=pltpu.CompilerParams(
            dimension_semantics=("parallel", "parallel"),
            vmem_limit_bytes=32 * 1024 * 1024),
        cost_estimate=pl.CostEstimate(
            flops=2 * N * Cout * K * L,
            transcendentals=N * Cout * L,
            bytes_accessed=bytes_accessed),
    )(*planes, w_flat, shift)


# ----------------------------------------------------------------------------
# Thin JAX glue: zero-pad + parity split + flatten (one cheap pass over input)
# ----------------------------------------------------------------------------
def conv_bn_gelu(x_nchw, w, b, gamma, beta, mean, var, *, eps=1e-5,
                 out_dtype=jnp.float32):
    """One stem stage. x: [N, Cin, H, W]; w: [Cout, Cin, 3, 3] (PyTorch layout).
    Returns [N, Cout, Ho, Wo] in out_dtype."""
    N, Cin, H, W = x_nchw.shape
    Cout = w.shape[0]
    Ho = (H + 1) // 2
    Wo = (W + 1) // 2
    Hp, Wp = Ho + 1, Wo + 1

    # Pad the contraction channel dim to a bf16 sublane-pack multiple so the
    # in-kernel sublane concat is clean tile stacking.
    Cin_p = _round_up(max(Cin, 1), 16)
    # Lane-dense output length (multiple of 128 -> unmasked stores even at
    # toy sizes); flat plane length must cover the largest tap offset.
    L = _round_up(Ho * Wp, 128)
    Lp = _round_up(Wp + 1 + L, 128)

    # Fold BN (running stats) into the conv: scale into weights, shift in-kernel.
    scale = gamma / jnp.sqrt(var + eps)
    w_khwc = jnp.transpose(w, (0, 2, 3, 1))                       # (Cout,3,3,Cin)
    w_khwc = jnp.pad(w_khwc, ((0, 0), (0, 0), (0, 0), (0, Cin_p - Cin)))
    w_flat = (w_khwc.reshape(Cout, 9 * Cin_p)
              * scale[:, None]).astype(jnp.bfloat16)
    shift = ((b - mean) * scale + beta).reshape(Cout, 1).astype(jnp.float32)

    # Zero-pad (conv padding + channel pad + evenness), parity-split, flatten.
    xp = jnp.pad(x_nchw.astype(jnp.bfloat16),
                 ((0, 0), (0, Cin_p - Cin),
                  (1, 1 + (H % 2)), (1, 1 + (W % 2))))
    raw_planes = (xp[:, :, 0::2, 0::2], xp[:, :, 0::2, 1::2],
                  xp[:, :, 1::2, 0::2], xp[:, :, 1::2, 1::2])     # (N,Cin_p,Hp,Wp)
    planes = [jnp.pad(p.reshape(N, Cin_p, Hp * Wp),
                      ((0, 0), (0, 0), (0, Lp - Hp * Wp)))
              for p in raw_planes]                                # (N,Cin_p,Lp)

    out_flat = _stage_pallas(planes, w_flat, shift, Wp=Wp, L=L,
                             out_dtype=out_dtype)                 # (N,Cout,L)

    # Drop the padded lanes and the per-row junk column (w == Wo); this is
    # cheap XLA layout plumbing that fuses with the next stage's pad/split.
    out = out_flat[:, :, :Ho * Wp].reshape(N, Cout, Ho, Wp)[:, :, :, :Wo]
    return out                                                    # NCHW


# ----------------------------------------------------------------------------
# Stem module (parameters initialized deterministically in-script)
# ----------------------------------------------------------------------------
def init_stem_params(key, input_dim, output_dim):
    mid = output_dim // 2
    k1, k2, k3, k4 = jax.random.split(key, 4)
    return {
        "w1": jax.random.normal(k1, (mid, input_dim, 3, 3), jnp.float32) * 0.1,
        "b1": jax.random.normal(k2, (mid,), jnp.float32) * 0.01,
        "g1": jnp.ones((mid,), jnp.float32),
        "be1": jnp.zeros((mid,), jnp.float32),
        "m1": jnp.zeros((mid,), jnp.float32),
        "v1": jnp.ones((mid,), jnp.float32),
        "w2": jax.random.normal(k3, (output_dim, mid, 3, 3), jnp.float32) * 0.1,
        "b2": jax.random.normal(k4, (output_dim,), jnp.float32) * 0.01,
        "g2": jnp.ones((output_dim,), jnp.float32),
        "be2": jnp.zeros((output_dim,), jnp.float32),
        "m2": jnp.zeros((output_dim,), jnp.float32),
        "v2": jnp.ones((output_dim,), jnp.float32),
    }


@jax.jit
def stem_forward(x_nchw, params):
    y = conv_bn_gelu(x_nchw, params["w1"], params["b1"], params["g1"],
                     params["be1"], params["m1"], params["v1"],
                     out_dtype=jnp.bfloat16)   # bf16 intermediate feeds stage 2
    y = conv_bn_gelu(y, params["w2"], params["b2"], params["g2"],
                     params["be2"], params["m2"], params["v2"],
                     out_dtype=jnp.float32)
    return y                                    # NCHW, matches PyTorch


# ----------------------------------------------------------------------------
# Pure-JAX reference (PyTorch semantics: exact erf GELU, f32)
# ----------------------------------------------------------------------------
def _ref_stage(x, w, b, gamma, beta, mean, var, eps=1e-5):
    y = lax.conv_general_dilated(
        x, w, window_strides=(2, 2), padding=((1, 1), (1, 1)),
        dimension_numbers=("NCHW", "OIHW", "NCHW"))
    y = y + b[None, :, None, None]
    y = ((y - mean[None, :, None, None])
         / jnp.sqrt(var[None, :, None, None] + eps)
         * gamma[None, :, None, None] + beta[None, :, None, None])
    return 0.5 * y * (1.0 + lax.erf(y / math.sqrt(2.0)))


def stem_reference(x_nchw, p):
    y = _ref_stage(x_nchw, p["w1"], p["b1"], p["g1"], p["be1"], p["m1"], p["v1"])
    y = _ref_stage(y, p["w2"], p["b2"], p["g2"], p["be2"], p["m2"], p["v2"])
    return y


if __name__ == "__main__":
    key = jax.random.PRNGKey(0)
    kx, kp = jax.random.split(key)

    N, Cin, H, W = 2, 4, 16, 16
    output_dim = 32

    x = jax.random.normal(kx, (N, Cin, H, W), jnp.float32)
    params = init_stem_params(kp, Cin, output_dim)

    out = jax.block_until_ready(stem_forward(x, params))
    assert out.shape == (N, output_dim, H // 4, W // 4), out.shape

    ref = stem_reference(x, params)
    # bf16 operands + tanh-approx GELU -> relaxed tolerance vs. exact-erf f32 ref.
    max_err = float(jnp.max(jnp.abs(out - ref)))
    assert jnp.allclose(out, ref, atol=3e-2, rtol=3e-2), max_err

    print("KERNEL_OK")
</pallas_src>

<mosaic_0001>
module attributes {stable_mosaic.version = 11 : i64} {
  func.func @_stem_conv_kernel(%arg0: i32, %arg1: i32, %arg2: memref<1x16x256xbf16, #tpu.memory_space<vmem>>, %arg3: memref<1x16x256xbf16, #tpu.memory_space<vmem>>, %arg4: memref<1x16x256xbf16, #tpu.memory_space<vmem>>, %arg5: memref<1x16x256xbf16, #tpu.memory_space<vmem>>, %arg6: memref<8x144xbf16, #tpu.memory_space<vmem>>, %arg7: memref<8x1xf32, #tpu.memory_space<vmem>>, %arg8: memref<1x8x128xbf16, #tpu.memory_space<vmem>>) attributes {dimension_semantics = [#tpu.dimension_semantics<parallel>, #tpu.dimension_semantics<parallel>], iteration_bounds = array<i64: 2, 2>, scalar_prefetch = 0 : i64, scratch_operands = 0 : i64, tpu.core_type = #tpu.core_type<tc>, window_params = [{transform_indices = @transform_0, window_bounds = array<i64: 1, 16, 256>}, {transform_indices = @transform_1, window_bounds = array<i64: 1, 16, 256>}, {transform_indices = @transform_2, window_bounds = array<i64: 1, 16, 256>}, {transform_indices = @transform_3, window_bounds = array<i64: 1, 16, 256>}, {transform_indices = @transform_4, window_bounds = array<i64: 8, 144>}, {transform_indices = @transform_5, window_bounds = array<i64: 8, 1>}, {transform_indices = @transform_6, window_bounds = array<i64: 1, 8, 128>}]} {
    %c0 = arith.constant 0 : index
    %c0_0 = arith.constant 0 : index
    %c0_1 = arith.constant 0 : index
    %0 = vector.load %arg2[%c0, %c0_0, %c0_1] : memref<1x16x256xbf16, #tpu.memory_space<vmem>>, vector<1x16x128xbf16>
    %1 = vector.shape_cast %0 : vector<1x16x128xbf16> to vector<16x128xbf16>
    %c0_2 = arith.constant 0 : index
    %c0_3 = arith.constant 0 : index
    %c0_4 = arith.constant 0 : index
    %2 = vector.load %arg3[%c0_2, %c0_3, %c0_4] : memref<1x16x256xbf16, #tpu.memory_space<vmem>>, vector<1x16x128xbf16>
    %3 = vector.shape_cast %2 : vector<1x16x128xbf16> to vector<16x128xbf16>
    %c0_5 = arith.constant 0 : index
    %c0_6 = arith.constant 0 : index
    %c1 = arith.constant 1 : index
    %4 = vector.load %arg2[%c0_5, %c0_6, %c1] : memref<1x16x256xbf16, #tpu.memory_space<vmem>>, vector<1x16x128xbf16>
    %5 = vector.shape_cast %4 : vector<1x16x128xbf16> to vector<16x128xbf16>
    %c0_7 = arith.constant 0 : index
    %c0_8 = arith.constant 0 : index
    %c0_9 = arith.constant 0 : index
    %6 = vector.load %arg4[%c0_7, %c0_8, %c0_9] : memref<1x16x256xbf16, #tpu.memory_space<vmem>>, vector<1x16x128xbf16>
    %7 = vector.shape_cast %6 : vector<1x16x128xbf16> to vector<16x128xbf16>
    %c0_10 = arith.constant 0 : index
    %c0_11 = arith.constant 0 : index
    %c0_12 = arith.constant 0 : index
    %8 = vector.load %arg5[%c0_10, %c0_11, %c0_12] : memref<1x16x256xbf16, #tpu.memory_space<vmem>>, vector<1x16x128xbf16>
    %9 = vector.shape_cast %8 : vector<1x16x128xbf16> to vector<16x128xbf16>
    %c0_13 = arith.constant 0 : index
    %c0_14 = arith.constant 0 : index
    %c1_15 = arith.constant 1 : index
    %10 = vector.load %arg4[%c0_13, %c0_14, %c1_15] : memref<1x16x256xbf16, #tpu.memory_space<vmem>>, vector<1x16x128xbf16>
    %11 = vector.shape_cast %10 : vector<1x16x128xbf16> to vector<16x128xbf16>
    %c0_16 = arith.constant 0 : index
    %c0_17 = arith.constant 0 : index
    %c9 = arith.constant 9 : index
    %12 = vector.load %arg2[%c0_16, %c0_17, %c9] : memref<1x16x256xbf16, #tpu.memory_space<vmem>>, vector<1x16x128xbf16>
    %13 = vector.shape_cast %12 : vector<1x16x128xbf16> to vector<16x128xbf16>
    %c0_18 = arith.constant 0 : index
    %c0_19 = arith.constant 0 : index
    %c9_20 = arith.constant 9 : index
    %14 = vector.load %arg3[%c0_18, %c0_19, %c9_20] : memref<1x16x256xbf16, #tpu.memory_space<vmem>>, vector<1x16x128xbf16>
    %15 = vector.shape_cast %14 : vector<1x16x128xbf16> to vector<16x128xbf16>
    %c0_21 = arith.constant 0 : index
    %c0_22 = arith.constant 0 : index
    %c10 = arith.constant 10 : index
    %16 = vector.load %arg2[%c0_21, %c0_22, %c10] : memref<1x16x256xbf16, #tpu.memory_space<vmem>>, vector<1x16x128xbf16>
    %17 = vector.shape_cast %16 : vector<1x16x128xbf16> to vector<16x128xbf16>
    %18 = tpu.concatenate %1, %3, %5, %7, %9, %11, %13, %15, %17 in 0 : vector<16x128xbf16>, vector<16x128xbf16>, vector<16x128xbf16>, vector<16x128xbf16>, vector<16x128xbf16>, vector<16x128xbf16>, vector<16x128xbf16>, vector<16x128xbf16>, vector<16x128xbf16> -> vector<144x128xbf16>
    %c0_23 = arith.constant 0 : index
    %c0_24 = arith.constant 0 : index
    %19 = vector.load %arg6[%c0_23, %c0_24] : memref<8x144xbf16, #tpu.memory_space<vmem>>, vector<8x144xbf16>
    %cst = arith.constant dense<0.000000e+00> : vector<8x128xf32>
    %20 = tpu.matmul %19, %18, %cst {dimension_numbers = #tpu.dot_dimension_numbers<[1], [0], [0], [1], [0, 0, 1, 1], [], []>} : vector<8x144xbf16>, vector<144x128xbf16>, vector<8x128xf32> -> vector<8x128xf32>
    %c0_25 = arith.constant 0 : index
    %c0_26 = arith.constant 0 : index
    %21 = vector.load %arg7[%c0_25, %c0_26] : memref<8x1xf32, #tpu.memory_space<vmem>>, vector<8x1xf32>
    %22 = vector.broadcast %21 : vector<8x1xf32> to vector<8x128xf32>
    %23 = arith.addf %20, %22 : vector<8x128xf32>
    %24 = arith.mulf %23, %23 : vector<8x128xf32>
    %25 = arith.mulf %23, %24 : vector<8x128xf32>
    %cst_27 = arith.constant 4.471500e-02 : f32
    %26 = vector.broadcast %cst_27 : f32 to vector<8x128xf32>
    %27 = arith.mulf %26, %25 : vector<8x128xf32>
    %28 = arith.addf %23, %27 : vector<8x128xf32>
    %cst_28 = arith.constant 0.797884583 : f32
    %29 = vector.broadcast %cst_28 : f32 to vector<8x128xf32>
    %30 = arith.mulf %29, %28 : vector<8x128xf32>
    %31 = math.tanh %30 : vector<8x128xf32>
    %cst_29 = arith.constant 1.000000e+00 : f32
    %32 = vector.broadcast %cst_29 : f32 to vector<8x128xf32>
    %33 = arith.addf %32, %31 : vector<8x128xf32>
    %cst_30 = arith.constant 5.000000e-01 : f32
    %34 = vector.broadcast %cst_30 : f32 to vector<8x128xf32>
    %35 = arith.mulf %34, %33 : vector<8x128xf32>
    %36 = arith.mulf %23, %35 : vector<8x128xf32>
    %37 = arith.truncf %36 : vector<8x128xf32> to vector<8x128xbf16>
    %c0_31 = arith.constant 0 : index
    %c0_32 = arith.constant 0 : index
    %c0_33 = arith.constant 0 : index
    %38 = vector.load %arg8[%c0_31, %c0_32, %c0_33] : memref<1x8x128xbf16, #tpu.memory_space<vmem>>, vector<1x8x128xbf16>
    %39 = vector.shape_cast %38 : vector<1x8x128xbf16> to vector<8x128xbf16>
    %40 = vector.shape_cast %37 : vector<8x128xbf16> to vector<1x8x128xbf16>
    tpu.vector_store %arg8[%c0_31, %c0_32, %c0_33], %40 {strides = array<i32>} : memref<1x8x128xbf16, #tpu.memory_space<vmem>>, vector<1x8x128xbf16>,
    return
  }
  func.func @transform_0(%arg0: i32, %arg1: i32) -> (i32, i32, i32) {
    %c0_i32 = arith.constant 0 : i32
    %c0_i32_0 = arith.constant 0 : i32
    %c0_i32_1 = arith.constant 0 : i32
    return %arg0, %c0_i32, %c0_i32_0 : i32, i32, i32
  }
  func.func @transform_1(%arg0: i32, %arg1: i32) -> (i32, i32, i32) {
    %c0_i32 = arith.constant 0 : i32
    %c0_i32_0 = arith.constant 0 : i32
    %c0_i32_1 = arith.constant 0 : i32
    return %arg0, %c0_i32, %c0_i32_0 : i32, i32, i32
  }
  func.func @transform_2(%arg0: i32, %arg1: i32) -> (i32, i32, i32) {
    %c0_i32 = arith.constant 0 : i32
    %c0_i32_0 = arith.constant 0 : i32
    %c0_i32_1 = arith.constant 0 : i32
    return %arg0, %c0_i32, %c0_i32_0 : i32, i32, i32
  }
  func.func @transform_3(%arg0: i32, %arg1: i32) -> (i32, i32, i32) {
    %c0_i32 = arith.constant 0 : i32
    %c0_i32_0 = arith.constant 0 : i32
    %c0_i32_1 = arith.constant 0 : i32
    return %arg0, %c0_i32, %c0_i32_0 : i32, i32, i32
  }
  func.func @transform_4(%arg0: i32, %arg1: i32) -> (i32, i32) {
    %c0_i32 = arith.constant 0 : i32
    %c0_i32_0 = arith.constant 0 : i32
    return %arg1, %c0_i32 : i32, i32
  }
  func.func @transform_5(%arg0: i32, %arg1: i32) -> (i32, i32) {
    %c0_i32 = arith.constant 0 : i32
    %c0_i32_0 = arith.constant 0 : i32
    return %arg1, %c0_i32 : i32, i32
  }
  func.func @transform_6(%arg0: i32, %arg1: i32) -> (i32, i32, i32) {
    %c0_i32 = arith.constant 0 : i32
    %c0_i32_0 = arith.constant 0 : i32
    return %arg0, %arg1, %c0_i32 : i32, i32, i32
  }
}

module attributes {stable_mosaic.version = 11 : i64} {
  func.func @_stem_conv_kernel(%arg0: i32, %arg1: i32, %arg2: memref<1x16x256xbf16, #tpu.memory_space<vmem>>, %arg3: memref<1x16x256xbf16, #tpu.memory_space<vmem>>, %arg4: memref<1x16x256xbf16, #tpu.memory_space<vmem>>, %arg5: memref<1x16x256xbf16, #tpu.memory_space<vmem>>, %arg6: memref<16x144xbf16, #tpu.memory_space<vmem>>, %arg7: memref<16x1xf32, #tpu.memory_space<vmem>>, %arg8: memref<1x16x128xf32, #tpu.memory_space<vmem>>) attributes {dimension_semantics = [#tpu.dimension_semantics<parallel>, #tpu.dimension_semantics<parallel>], iteration_bounds = array<i64: 2, 2>, scalar_prefetch = 0 : i64, scratch_operands = 0 : i64, tpu.core_type = #tpu.core_type<tc>, window_params = [{transform_indices = @transform_0, window_bounds = array<i64: 1, 16, 256>}, {transform_indices = @transform_1, window_bounds = array<i64: 1, 16, 256>}, {transform_indices = @transform_2, window_bounds = array<i64: 1, 16, 256>}, {transform_indices = @transform_3, window_bounds = array<i64: 1, 16, 256>}, {transform_indices = @transform_4, window_bounds = array<i64: 16, 144>}, {transform_indices = @transform_5, window_bounds = array<i64: 16, 1>}, {transform_indices = @transform_6, window_bounds = array<i64: 1, 16, 128>}]} {
    %c0 = arith.constant 0 : index
    %c0_0 = arith.constant 0 : index
    %c0_1 = arith.constant 0 : index
    %0 = vector.load %arg2[%c0, %c0_0, %c0_1] : memref<1x16x256xbf16, #tpu.memory_space<vmem>>, vector<1x16x128xbf16>
    %1 = vector.shape_cast %0 : vector<1x16x128xbf16> to vector<16x128xbf16>
    %c0_2 = arith.constant 0 : index
    %c0_3 = arith.constant 0 : index
    %c0_4 = arith.constant 0 : index
    %2 = vector.load %arg3[%c0_2, %c0_3, %c0_4] : memref<1x16x256xbf16, #tpu.memory_space<vmem>>, vector<1x16x128xbf16>
    %3 = vector.shape_cast %2 : vector<1x16x128xbf16> to vector<16x128xbf16>
    %c0_5 = arith.constant 0 : index
    %c0_6 = arith.constant 0 : index
    %c1 = arith.constant 1 : index
    %4 = vector.load %arg2[%c0_5, %c0_6, %c1] : memref<1x16x256xbf16, #tpu.memory_space<vmem>>, vector<1x16x128xbf16>
    %5 = vector.shape_cast %4 : vector<1x16x128xbf16> to vector<16x128xbf16>
    %c0_7 = arith.constant 0 : index
    %c0_8 = arith.constant 0 : index
    %c0_9 = arith.constant 0 : index
    %6 = vector.load %arg4[%c0_7, %c0_8, %c0_9] : memref<1x16x256xbf16, #tpu.memory_space<vmem>>, vector<1x16x128xbf16>
    %7 = vector.shape_cast %6 : vector<1x16x128xbf16> to vector<16x128xbf16>
    %c0_10 = arith.constant 0 : index
    %c0_11 = arith.constant 0 : index
    %c0_12 = arith.constant 0 : index
    %8 = vector.load %arg5[%c0_10, %c0_11, %c0_12] : memref<1x16x256xbf16, #tpu.memory_space<vmem>>, vector<1x16x128xbf16>
    %9 = vector.shape_cast %8 : vector<1x16x128xbf16> to vector<16x128xbf16>
    %c0_13 = arith.constant 0 : index
    %c0_14 = arith.constant 0 : index
    %c1_15 = arith.constant 1 : index
    %10 = vector.load %arg4[%c0_13, %c0_14, %c1_15] : memref<1x16x256xbf16, #tpu.memory_space<vmem>>, vector<1x16x128xbf16>
    %11 = vector.shape_cast %10 : vector<1x16x128xbf16> to vector<16x128xbf16>
    %c0_16 = arith.constant 0 : index
    %c0_17 = arith.constant 0 : index
    %c5 = arith.constant 5 : index
    %12 = vector.load %arg2[%c0_16, %c0_17, %c5] : memref<1x16x256xbf16, #tpu.memory_space<vmem>>, vector<1x16x128xbf16>
    %13 = vector.shape_cast %12 : vector<1x16x128xbf16> to vector<16x128xbf16>
    %c0_18 = arith.constant 0 : index
    %c0_19 = arith.constant 0 : index
    %c5_20 = arith.constant 5 : index
    %14 = vector.load %arg3[%c0_18, %c0_19, %c5_20] : memref<1x16x256xbf16, #tpu.memory_space<vmem>>, vector<1x16x128xbf16>
    %15 = vector.shape_cast %14 : vector<1x16x128xbf16> to vector<16x128xbf16>
    %c0_21 = arith.constant 0 : index
    %c0_22 = arith.constant 0 : index
    %c6 = arith.constant 6 : index
    %16 = vector.load %arg2[%c0_21, %c0_22, %c6] : memref<1x16x256xbf16, #tpu.memory_space<vmem>>, vector<1x16x128xbf16>
    %17 = vector.shape_cast %16 : vector<1x16x128xbf16> to vector<16x128xbf16>
    %18 = tpu.concatenate %1, %3, %5, %7, %9, %11, %13, %15, %17 in 0 : vector<16x128xbf16>, vector<16x128xbf16>, vector<16x128xbf16>, vector<16x128xbf16>, vector<16x128xbf16>, vector<16x128xbf16>, vector<16x128xbf16>, vector<16x128xbf16>, vector<16x128xbf16> -> vector<144x128xbf16>
    %c0_23 = arith.constant 0 : index
    %c0_24 = arith.constant 0 : index
    %19 = vector.load %arg6[%c0_23, %c0_24] : memref<16x144xbf16, #tpu.memory_space<vmem>>, vector<16x144xbf16>
    %cst = arith.constant dense<0.000000e+00> : vector<16x128xf32>
    %20 = tpu.matmul %19, %18, %cst {dimension_numbers = #tpu.dot_dimension_numbers<[1], [0], [0], [1], [0, 0, 1, 1], [], []>} : vector<16x144xbf16>, vector<144x128xbf16>, vector<16x128xf32> -> vector<16x128xf32>
    %c0_25 = arith.constant 0 : index
    %c0_26 = arith.constant 0 : index
    %21 = vector.load %arg7[%c0_25, %c0_26] : memref<16x1xf32, #tpu.memory_space<vmem>>, vector<16x1xf32>
    %22 = vector.broadcast %21 : vector<16x1xf32> to vector<16x128xf32>
    %23 = arith.addf %20, %22 : vector<16x128xf32>
    %24 = arith.mulf %23, %23 : vector<16x128xf32>
    %25 = arith.mulf %23, %24 : vector<16x128xf32>
    %cst_27 = arith.constant 4.471500e-02 : f32
    %26 = vector.broadcast %cst_27 : f32 to vector<16x128xf32>
    %27 = arith.mulf %26, %25 : vector<16x128xf32>
    %28 = arith.addf %23, %27 : vector<16x128xf32>
    %cst_28 = arith.constant 0.797884583 : f32
    %29 = vector.broadcast %cst_28 : f32 to vector<16x128xf32>
    %30 = arith.mulf %29, %28 : vector<16x128xf32>
    %31 = math.tanh %30 : vector<16x128xf32>
    %cst_29 = arith.constant 1.000000e+00 : f32
    %32 = vector.broadcast %cst_29 : f32 to vector<16x128xf32>
    %33 = arith.addf %32, %31 : vector<16x128xf32>
    %cst_30 = arith.constant 5.000000e-01 : f32
    %34 = vector.broadcast %cst_30 : f32 to vector<16x128xf32>
    %35 = arith.mulf %34, %33 : vector<16x128xf32>
    %36 = arith.mulf %23, %35 : vector<16x128xf32>
    %c0_31 = arith.constant 0 : index
    %c0_32 = arith.constant 0 : index
    %c0_33 = arith.constant 0 : index
    %37 = vector.load %arg8[%c0_31, %c0_32, %c0_33] : memref<1x16x128xf32, #tpu.memory_space<vmem>>, vector<1x16x128xf32>
    %38 = vector.shape_cast %37 : vector<1x16x128xf32> to vector<16x128xf32>
    %39 = vector.shape_cast %36 : vector<16x128xf32> to vector<1x16x128xf32>
    tpu.vector_store %arg8[%c0_31, %c0_32, %c0_33], %39 {strides = array<i32>} : memref<1x16x128xf32, #tpu.memory_space<vmem>>, vector<1x16x128xf32>,
    return
  }
  func.func @transform_0(%arg0: i32, %arg1: i32) -> (i32, i32, i32) {
    %c0_i32 = arith.constant 0 : i32
    %c0_i32_0 = arith.constant 0 : i32
    %c0_i32_1 = arith.constant 0 : i32
    return %arg0, %c0_i32, %c0_i32_0 : i32, i32, i32
  }
  func.func @transform_1(%arg0: i32, %arg1: i32) -> (i32, i32, i32) {
    %c0_i32 = arith.constant 0 : i32
    %c0_i32_0 = arith.constant 0 : i32
    %c0_i32_1 = arith.constant 0 : i32
    return %arg0, %c0_i32, %c0_i32_0 : i32, i32, i32
  }
  func.func @transform_2(%arg0: i32, %arg1: i32) -> (i32, i32, i32) {
    %c0_i32 = arith.constant 0 : i32
    %c0_i32_0 = arith.constant 0 : i32
    %c0_i32_1 = arith.constant 0 : i32
    return %arg0, %c0_i32, %c0_i32_0 : i32, i32, i32
  }
  func.func @transform_3(%arg0: i32, %arg1: i32) -> (i32, i32, i32) {
    %c0_i32 = arith.constant 0 : i32
    %c0_i32_0 = arith.constant 0 : i32
    %c0_i32_1 = arith.constant 0 : i32
    return %arg0, %c0_i32, %c0_i32_0 : i32, i32, i32
  }
  func.func @transform_4(%arg0: i32, %arg1: i32) -> (i32, i32) {
    %c0_i32 = arith.constant 0 : i32
    %c0_i32_0 = arith.constant 0 : i32
    return %arg1, %c0_i32 : i32, i32
  }
  func.func @transform_5(%arg0: i32, %arg1: i32) -> (i32, i32) {
    %c0_i32 = arith.constant 0 : i32
    %c0_i32_0 = arith.constant 0 : i32
    return %arg1, %c0_i32 : i32, i32
  }
  func.func @transform_6(%arg0: i32, %arg1: i32) -> (i32, i32, i32) {
    %c0_i32 = arith.constant 0 : i32
    %c0_i32_0 = arith.constant 0 : i32
    return %arg0, %arg1, %c0_i32 : i32, i32, i32
  }
}

</mosaic_0001>

<bundles_post_ra>
// kernel: stem_forward.2
= control target key start
LH: loop header
LB: loop body
LE: loop exit
PB: predicated region body
PF: predicated region fallthrough
CT: control target
= control target key end

     0   :  { %s852_s21 = smov 0   ;;  %s854_s22 = smov 0   ;;  %s967_s0 = inlined_call_operand.vmem [shape: bf16[2,16,256], index: 0, kind: input, shape index: {}]   ;;  %s968_s1 = inlined_call_operand.vmem [shape: bf16[2,16,256], index: 1, kind: input, shape index: {}]   ;;  %s969_s2 = inlined_call_operand.vmem [shape: bf16[2,16,256], index: 2, kind: input, shape index: {}]   ;;  %s970_s3 = inlined_call_operand.vmem [shape: bf16[2,16,256], index: 3, kind: input, shape index: {}]   ;;  %s971_s4 = inlined_call_operand.vmem [shape: bf16[16,144], index: 4, kind: input, shape index: {}]   ;;  %s972_s5 = inlined_call_operand.vmem [shape: f32[16,1], index: 5, kind: input, shape index: {}]   ;;  %s973_s6 = inlined_call_operand.vmem [shape: bf16[2,16,128], index: 6, kind: output, shape index: {}]  }
   0x1   :  { %s856_s23 = smov 0   ;;  %s858_s24 = smov 0  }
   0x2   :  { %s860_s25 = smov 0  }
   0x3 LB: > { %s25_s26 = sadd.s32 1, %s803_s23  ;;  %s28_s27 = sadd.s32 1, %s807_s24  ;;  %s811_s25 = sphi %s860_s25, %s16_s25   ;;  %s807_s24 = sphi %s858_s24, %s977_s24   ;;  %s803_s23 = sphi %s856_s23, %s976_s23   ;;  %s799_s22 = sphi %s854_s22, %s975_s22   ;;  %s795_s21 = sphi %s852_s21, %s974_s21  }
   0x4   : > { %p26_p0 = scmp.ge.s32.totalorder %s25_s26, 2  ;;  %p677_p1 = scmp.ge.s32.totalorder %s811_s25, 1 }
   0x5   : > { %p275_p2 = scmp.lt.s32.totalorder %s811_s25, 5 }
   0x6   : > { %s979_s26 = smov (%p26_p0, %s25_s26), 0  ;;  %s981_s27 = smov (!%p26_p0, %s28_s27), %s807_s24 }
   0x7   : > { %p276_p3 = pnand %p677_p1, %p275_p2  ;;  %p30_p4 = scmp.ge.s32.totalorder %s981_s27, 2 }
   0x8   : > { %p332_p5 = scmp.lt.s32.totalorder (!%p276_p3), %s799_s22, 1  ;;  %s814_s14 = smov (!%p276_p3), 119  }
   0x9   : > { %s983_s27 = smov (%p30_p4, %s981_s27), 0  ;;  %279 = sbr.rel (%p276_p3) target bundleno = 401 (0x191), region = 44 }
   0xa   : > { %s815_s18 = smov (!%p276_p3), 127   ;;  %s816_s19 = smov (!%p276_p3), 118  }
   0xb   : > { %p352_p6 = scmp.lt.s32.totalorder (!%p276_p3), %s795_s21, 1 }
   0xe   : > { %v813_v0 = vmov 0   ;;  %s985_s22 = smov (!%p332_p5, %s799_s22), 1  ;;  %s987_s21 = smov (!%p352_p6, %s795_s21), 1  ;;  %vm478_vm0 = vcmask 130048   ;;  %vm441_vm1 = vcmask 973824   ;;  %vm408_vm2 = vcmask 1039360  }
   0xf   : > { %482 = vmatprep.subr.bf16.mxu0 %v813_v0  ;;  %755 = vset.pattern.permute.xlu0 %v813_v0  ;;  %s889_s28 = sshll.u32 %s985_s22, 4  ;;  %s710_s20 = sshll.u32 %s987_s21, 3  ;;  %vm462_vm3 = vcmask 965632  }
  0x10   : > { %s895_s7 = scalar_lea.vmem %s968_s1, %s889_s28  ;;  %s901_s10 = scalar_lea.vmem %s967_s0, %s889_s28 }
  0x11   : > { %v756_v1 = vld [vmem:[%s895_s7] ss:$8 sps:$4 sm:$0xff]   ;;  %s908_s13 = scalar_lea.vmem %s969_s2, %s889_s28  ;;  %v758_v2 = vld [vmem:[%s895_s7 + $0x4] ss:$8 sps:$4 sm:$0xff]   ;;  %s351_s17 = scalar_lea.vmem %s970_s3, %s889_s28 }
  0x12   : > { %452 = vrot.lane.b32.xlu0 %v756_v1, %s814_s14  ;;  %v759_v3 = vld [vmem:[%s901_s10] ss:$8 sps:$4 sm:$0xff]   ;;  %v761_v4 = vld [vmem:[%s901_s10 + $0x4] ss:$8 sps:$4 sm:$0xff]   ;;  %s356_s8 = scalar_lea.vmem %s971_s4, %s710_s20  ;;  %s689_s9 = sshll.u32 %s985_s22, 1 }
  0x13   : > { %437 = vrot.lane.b32.xlu1 %v759_v3, %s814_s14  ;;  %v762_v5 = vld [vmem:[%s908_s13] ss:$8 sps:$4 sm:$0xff]   ;;  %v764_v6 = vld [vmem:[%s908_s13 + $0x4] ss:$8 sps:$4 sm:$0xff]   ;;  %s925_s11 = sadd.s32 %s689_s9, %s987_s21  ;;  %s360_s15 = scalar_lea.vmem %s972_s5, %s710_s20 }
  0x14   : > { %v465_v7 = vld [vmem:[%s356_s8] sm:$0xff]  ;;  %s690_s28 = sshll.u32 %s925_s11, 2 }
  0x15   : > { %v702_v8 = vcombine.high %v465_v7, %v465_v7  ;;  %v466_v9 = vld [vmem:[%s360_s15] sm:$0xff]  ;;  %v701_v29 = vcombine.low %v465_v7, %v465_v7 }
  0x16   : > { %454 = vrot.lane.b32.xlu0 %v758_v2, %s814_s14  ;;  %v765_v19 = vld [vmem:[%s351_s17] ss:$8 sps:$4 sm:$0xff]  }
  0x17   : > { %439 = vrot.lane.b32.xlu1 %v761_v4, %s814_s14  ;;  %703 = vmatprep.mubr.msk.bf16.mxu0 %vm478_vm0, %v702_v8  ;;  %v766_v20 = vld [vmem:[%s908_s13] ss:$8 sps:$4 sm:$0xff]   ;;  %s368_s13 = scalar_lea.vmem %s973_s6, %s690_s28 }
  0x18   : > { %v767_v24 = vld [vmem:[%s895_s7] ss:$8 sps:$4 sm:$0xff]  }
  0x19   : > { %v768_v25 = vld [vmem:[%s901_s10] ss:$8 sps:$4 sm:$0xff]  }
  0x1a   : > { %431 = vrot.lane.b32.xlu0 %v762_v5, %s815_s18 }
  0x1b   : > { %433 = vrot.lane.b32.xlu1 %v764_v6, %s815_s18 }
  0x1e   : > { %404 = vrot.lane.b32.xlu0 %v759_v3, %s815_s18 }
  0x1f   : > { %406 = vrot.lane.b32.xlu1 %v761_v4, %s815_s18 }
  0x22   : > { %458 = vrot.lane.b32.xlu0 %v759_v3, %s816_s19 }
  0x23   : > { %460 = vrot.lane.b32.xlu1 %v761_v4, %s816_s19 }
  0x26   : > { %469 = vperm.xlu0 %755, %v466_v9  }
  0x84   : > { %v453_v10 = vpop.permute.xlu0 %452 }
  0x85   : > { %v438_v11 = vpop.permute.xlu1 %437 }
  0x88   : > { %v455_v12 = vpop.permute.xlu0 %454 }
  0x89   : > { %v456_v13 = vsel %vm441_vm1, %v453_v10, %v455_v12  ;;  %v440_v14 = vpop.permute.xlu1 %439 }
  0x8a   : > { %483 = vmatpush1.bf16.msra.mxu0 %v456_v13  ;;  %v442_v16 = vsel %vm441_vm1, %v438_v11, %v440_v14 }
  0x8b   : > { %484 = vmatprep.subr.bf16.mxu0 %v813_v0 }
  0x8c   : > { %v432_v15 = vpop.permute.xlu0 %431 }
  0x8d   : > { %v434_v17 = vpop.permute.xlu1 %433 }
  0x8e   : > { %485 = vmatpush1.bf16.msra.mxu0 %v442_v16  ;;  %v435_v18 = vsel %vm408_vm2, %v432_v15, %v434_v17 }
  0x8f   : > { %486 = vmatprep.subr.bf16.mxu0 %v813_v0 }
  0x90   : > { %v405_v21 = vpop.permute.xlu0 %404 }
  0x91   : > { %v407_v22 = vpop.permute.xlu1 %406 }
  0x92   : > { %487 = vmatpush1.bf16.msra.mxu0 %v435_v18  ;;  %v409_v23 = vsel %vm408_vm2, %v405_v21, %v407_v22 }
  0x93   : > { %488 = vmatprep.subr.bf16.mxu0 %v813_v0 }
  0x94   : > { %v459_v26 = vpop.permute.xlu0 %458 }
  0x95   : > { %v461_v27 = vpop.permute.xlu1 %460 }
  0x96   : > { %489 = vmatpush1.bf16.msra.mxu0 %v765_v19  ;;  %v463_v28 = vsel %vm462_vm3, %v459_v26, %v461_v27 }
  0x97   : > { %490 = vmatprep.subr.bf16.mxu0 %v813_v0 }
  0x9a   : > { %491 = vmatpush1.bf16.msra.mxu0 %v766_v20 }
  0x9b   : > { %492 = vmatprep.subr.bf16.mxu0 %v813_v0 }
  0x9e   : > { %493 = vmatpush1.bf16.msra.mxu0 %v409_v23 }
  0x9f   : > { %494 = vmatprep.subr.bf16.mxu0 %v813_v0 }
  0xa1   : > { %v470_v30 = vpop.permute.xlu0 %469 }
  0xa2   : > { %495 = vmatpush1.bf16.msra.mxu0 %v767_v24 }
  0xa3   : > { %496 = vmatprep.subr.bf16.mxu0 %v813_v0 }
  0xa6   : > { %497 = vmatpush1.bf16.msra.mxu0 %v768_v25 }
  0xa7   : > { %512 = vmatprep.subr.bf16.mxu0 %v813_v0 }
  0xaa   : > { %513 = vmatpush2.bf16.msra.mxu0 %v463_v28 }
  0xad   : > { %515 = vmatmul.mubr.bf16.vlgmr.msra.gmra.mxu0 %v701_v29 }
 0x16d   : > { %v516_v31 = vpop.f32.mrf.mxu0 }
 0x16e   : > { %v517_v32 = vadd.f32 %v516_v31, %v470_v30 }
 0x16f   : > { %v518_v33 = vpop.f32.mrf.mxu0 }
 0x170   : > { %v522_v34 = vmul.f32 %v517_v32, %v517_v32 }
 0x171   : > { %v519_v35 = vpop.f32.mrf.mxu0 }
 0x172   : > { %v523_v36 = vmul.f32 %v522_v34, %v517_v32 }
 0x173   : > { %v520_v37 = vpop.f32.mrf.mxu0 }
 0x174   : > { %v524_v38 = vmul.f32 0.044715, %v523_v36 }
 0x176   : > { %v525_v39 = vadd.f32 %v524_v38, %v517_v32 }
 0x178   : > { %v526_v40 = vmul.f32 0.7978846, %v525_v39 }
 0x17a   : > { %771 = vtanh.f32 %v526_v40 }
 0x187   : > { %v772_v41 = vpop.eup %771 }
 0x188   : > { %v528_v42 = vadd.f32 1.0, %v772_v41 }
 0x18a   : > { %v529_v43 = vmul.f32 0.5, %v528_v42 }
 0x18c   : > { %v530_v44 = vmul.f32 %v529_v43, %v517_v32 }
 0x18e   : > { %v531_v45 = vpack.c.bf16 %v530_v44, %v530_v44 }
 0x190   : > { %532 = vst [vmem:[%s368_s13] sm:$0xf] %v531_v45 }
 0x191 PF: > { %s16_s25 = sadd.s32 1, %s811_s25   ;;  %s974_s21 = smov %s803_s23 }
 0x192   : > { %p13_p7 = scmp.ge.s32.totalorder %s16_s25, 6   ;;  %s975_s22 = smov %s807_s24 }
 0x193   : > { %s976_s23 = smov %s979_s26  ;;  %s977_s24 = smov %s983_s27 }
 0x194   :  { %15 = sbr.rel (!%p13_p7) target bundleno = 3 (0x3), region = 89 }

// kernel: stem_forward.3
= control target key start
LH: loop header
LB: loop body
LE: loop exit
PB: predicated region body
PF: predicated region fallthrough
CT: control target
= control target key end

     0   :  { %s896_s21 = smov 0   ;;  %s898_s22 = smov 0   ;;  %s1015_s0 = inlined_call_operand.vmem [shape: bf16[2,16,256], index: 0, kind: input, shape index: {}]   ;;  %s1016_s1 = inlined_call_operand.vmem [shape: bf16[2,16,256], index: 1, kind: input, shape index: {}]   ;;  %s1017_s2 = inlined_call_operand.vmem [shape: bf16[2,16,256], index: 2, kind: input, shape index: {}]   ;;  %s1018_s3 = inlined_call_operand.vmem [shape: bf16[2,16,256], index: 3, kind: input, shape index: {}]   ;;  %s1019_s4 = inlined_call_operand.vmem [shape: bf16[32,144], index: 4, kind: input, shape index: {}]   ;;  %s1020_s5 = inlined_call_operand.vmem [shape: f32[32,1], index: 5, kind: input, shape index: {}]   ;;  %s1021_s6 = inlined_call_operand.vmem [shape: f32[2,32,128], index: 6, kind: output, shape index: {}]  }
   0x1   :  { %s900_s23 = smov 0   ;;  %s902_s24 = smov 0  }
   0x2   :  { %s904_s25 = smov 0  }
   0x3 LB: > { %s25_s26 = sadd.s32 1, %s847_s23  ;;  %s28_s27 = sadd.s32 1, %s851_s24  ;;  %s855_s25 = sphi %s904_s25, %s16_s25   ;;  %s851_s24 = sphi %s902_s24, %s1025_s24   ;;  %s847_s23 = sphi %s900_s23, %s1024_s23   ;;  %s843_s22 = sphi %s898_s22, %s1023_s22   ;;  %s839_s21 = sphi %s896_s21, %s1022_s21  }
   0x4   : > { %p26_p0 = scmp.ge.s32.totalorder %s25_s26, 2  ;;  %p714_p1 = scmp.ge.s32.totalorder %s855_s25, 1 }
   0x5   : > { %p279_p2 = scmp.lt.s32.totalorder %s855_s25, 5 }
   0x6   : > { %s1027_s26 = smov (%p26_p0, %s25_s26), 0  ;;  %s1029_s27 = smov (!%p26_p0, %s28_s27), %s851_s24 }
   0x7   : > { %p280_p3 = pnand %p714_p1, %p279_p2  ;;  %p30_p4 = scmp.ge.s32.totalorder %s1029_s27, 2 }
   0x8   : > { %p339_p5 = scmp.lt.s32.totalorder (!%p280_p3), %s843_s22, 1  ;;  %s858_s14 = smov (!%p280_p3), 123  }
   0x9   : > { %s1031_s27 = smov (%p30_p4, %s1029_s27), 0  ;;  %283 = sbr.rel (%p280_p3) target bundleno = 403 (0x193), region = 44 }
   0xa   : > { %s859_s18 = smov (!%p280_p3), 127   ;;  %s860_s19 = smov (!%p280_p3), 122  }
   0xb   : > { %s723_s20 = sshll.u32 (!%p280_p3), %s839_s21, 1 }
   0xc   : > { %p360_p6 = scmp.lt.s32.totalorder (!%p280_p3), %s723_s20, 3 }
   0xe   : > { %v857_v0 = vmov 0   ;;  %s1033_s22 = smov (!%p339_p5, %s843_s22), 1  ;;  %s1035_s20 = smov (!%p360_p6, %s723_s20), 3  ;;  %vm501_vm0 = vcmask 130048   ;;  %vm454_vm1 = vcmask 1006592   ;;  %vm421_vm2 = vcmask 1039360  }
   0xf   : > { %505 = vmatprep.subr.bf16.mxu0 %v857_v0  ;;  %795 = vset.pattern.permute.xlu0 %v857_v0  ;;  %s934_s28 = sshll.u32 %s1033_s22, 4  ;;  %s750_s29 = sshll.u32 %s1035_s20, 3  ;;  %vm475_vm3 = vcmask 998400  }
  0x10   : > { %796 = vset.pattern.permute.xlu1 %v857_v0  ;;  %s940_s7 = scalar_lea.vmem %s1016_s1, %s934_s28  ;;  %s946_s10 = scalar_lea.vmem %s1015_s0, %s934_s28 }
  0x11   : > { %v797_v1 = vld [vmem:[%s940_s7] ss:$8 sps:$4 sm:$0xff]   ;;  %s953_s13 = scalar_lea.vmem %s1017_s2, %s934_s28  ;;  %v799_v2 = vld [vmem:[%s940_s7 + $0x4] ss:$8 sps:$4 sm:$0xff]   ;;  %s358_s17 = scalar_lea.vmem %s1018_s3, %s934_s28 }
  0x12   : > { %465 = vrot.lane.b32.xlu0 %v797_v1, %s858_s14  ;;  %v800_v3 = vld [vmem:[%s946_s10] ss:$8 sps:$4 sm:$0xff]   ;;  %v802_v4 = vld [vmem:[%s946_s10 + $0x4] ss:$8 sps:$4 sm:$0xff]   ;;  %s729_s30 = sshll.u32 %s1033_s22, 2  ;;  %s969_s11 = scalar_lea.vmem %s1019_s4, %s750_s29 }
  0x13   : > { %450 = vrot.lane.b32.xlu1 %v800_v3, %s858_s14  ;;  %v803_v5 = vld [vmem:[%s953_s13] ss:$8 sps:$4 sm:$0xff]   ;;  %v805_v6 = vld [vmem:[%s953_s13 + $0x4] ss:$8 sps:$4 sm:$0xff]   ;;  %s971_s12 = sadd.s32 %s729_s30, %s1035_s20  ;;  %s370_s16 = scalar_lea.vmem %s1020_s5, %s750_s29 }
  0x14   : > { %v812_v7 = vld [vmem:[%s969_s11 + $0x4] ss:$8 sps:$4 sm:$0xff]   ;;  %v806_v19 = vld [vmem:[%s358_s17] ss:$8 sps:$4 sm:$0xff]   ;;  %s730_s28 = sshll.u32 %s971_s12, 3 }
  0x15   : > { %v480_v8 = vld [vmem:[%s370_s16] sm:$0xff]  ;;  %v481_v9 = vld [vmem:[%s370_s16 + $0x8] sm:$0xff]  ;;  %743 = vmatprep.mubr.msk.bf16.mxu0 %vm501_vm0, %v812_v7 }
  0x16   : > { %467 = vrot.lane.b32.xlu0 %v799_v2, %s858_s14  ;;  %v807_v20 = vld [vmem:[%s953_s13] ss:$8 sps:$4 sm:$0xff]   ;;  %s380_s13 = scalar_lea.vmem %s1021_s6, %s730_s28 }
  0x17   : > { %452 = vrot.lane.b32.xlu1 %v802_v4, %s858_s14  ;;  %v808_v24 = vld [vmem:[%s940_s7] ss:$8 sps:$4 sm:$0xff]  }
  0x18   : > { %v809_v25 = vld [vmem:[%s946_s10] ss:$8 sps:$4 sm:$0xff]  }
  0x19   : > { %v810_v29 = vld [vmem:[%s969_s11] ss:$8 sps:$4 sm:$0xff]  }
  0x1a   : > { %444 = vrot.lane.b32.xlu0 %v803_v5, %s859_s18 }
  0x1b   : > { %446 = vrot.lane.b32.xlu1 %v805_v6, %s859_s18 }
  0x1e   : > { %417 = vrot.lane.b32.xlu0 %v800_v3, %s859_s18 }
  0x1f   : > { %419 = vrot.lane.b32.xlu1 %v802_v4, %s859_s18 }
  0x22   : > { %471 = vrot.lane.b32.xlu0 %v800_v3, %s860_s19 }
  0x23   : > { %473 = vrot.lane.b32.xlu1 %v802_v4, %s860_s19 }
  0x26   : > { %484 = vperm.xlu0 %795, %v480_v8  }
  0x27   : > { %489 = vperm.xlu1 %796, %v481_v9  }
  0x84   : > { %v466_v10 = vpop.permute.xlu0 %465 }
  0x85   : > { %v451_v11 = vpop.permute.xlu1 %450 }
  0x88   : > { %v468_v12 = vpop.permute.xlu0 %467 }
  0x89   : > { %v469_v13 = vsel %vm454_vm1, %v466_v10, %v468_v12  ;;  %v453_v14 = vpop.permute.xlu1 %452 }
  0x8a   : > { %506 = vmatpush1.bf16.msra.mxu0 %v469_v13  ;;  %v455_v16 = vsel %vm454_vm1, %v451_v11, %v453_v14 }
  0x8b   : > { %507 = vmatprep.subr.bf16.mxu0 %v857_v0 }
  0x8c   : > { %v445_v15 = vpop.permute.xlu0 %444 }
  0x8d   : > { %v447_v17 = vpop.permute.xlu1 %446 }
  0x8e   : > { %508 = vmatpush1.bf16.msra.mxu0 %v455_v16  ;;  %v448_v18 = vsel %vm421_vm2, %v445_v15, %v447_v17 }
  0x8f   : > { %509 = vmatprep.subr.bf16.mxu0 %v857_v0 }
  0x90   : > { %v418_v21 = vpop.permute.xlu0 %417 }
  0x91   : > { %v420_v22 = vpop.permute.xlu1 %419 }
  0x92   : > { %510 = vmatpush1.bf16.msra.mxu0 %v448_v18  ;;  %v422_v23 = vsel %vm421_vm2, %v418_v21, %v420_v22 }
  0x93   : > { %511 = vmatprep.subr.bf16.mxu0 %v857_v0 }
  0x94   : > { %v472_v26 = vpop.permute.xlu0 %471 }
  0x95   : > { %v474_v27 = vpop.permute.xlu1 %473 }
  0x96   : > { %512 = vmatpush1.bf16.msra.mxu0 %v806_v19  ;;  %v476_v28 = vsel %vm475_vm3, %v472_v26, %v474_v27 }
  0x97   : > { %513 = vmatprep.subr.bf16.mxu0 %v857_v0 }
  0x9a   : > { %514 = vmatpush1.bf16.msra.mxu0 %v807_v20 }
  0x9b   : > { %515 = vmatprep.subr.bf16.mxu0 %v857_v0 }
  0x9e   : > { %516 = vmatpush1.bf16.msra.mxu0 %v422_v23 }
  0x9f   : > { %517 = vmatprep.subr.bf16.mxu0 %v857_v0 }
  0xa1   : > { %v485_v30 = vpop.permute.xlu0 %484 }
  0xa2   : > { %518 = vmatpush1.bf16.msra.mxu0 %v808_v24  ;;  %v490_v34 = vpop.permute.xlu1 %489 }
  0xa3   : > { %519 = vmatprep.subr.bf16.mxu0 %v857_v0 }
  0xa6   : > { %520 = vmatpush1.bf16.msra.mxu0 %v809_v25 }
  0xa7   : > { %535 = vmatprep.subr.bf16.mxu0 %v857_v0 }
  0xaa   : > { %536 = vmatpush2.bf16.msra.mxu0 %v476_v28 }
  0xad   : > { %538 = vmatmul.mubr.bf16.vlgmr.msra.gmra.mxu0 %v810_v29 }
 0x16d   : > { %v539_v31 = vpop.f32.mrf.mxu0 }
 0x16e   : > { %v540_v32 = vadd.f32 %v539_v31, %v485_v30 }
 0x16f   : > { %v541_v33 = vpop.f32.mrf.mxu0 }
 0x170   : > { %v546_v35 = vmul.f32 %v540_v32, %v540_v32 }
 0x171   : > { %v542_v36 = vpop.f32.mrf.mxu0 }
 0x172   : > { %v548_v37 = vmul.f32 %v546_v35, %v540_v32  ;;  %v543_v38 = vadd.f32 %v542_v36, %v490_v34 }
 0x173   : > { %v544_v39 = vpop.f32.mrf.mxu0 }
 0x174   : > { %v550_v40 = vmul.f32 0.044715, %v548_v37  ;;  %v547_v41 = vmul.f32 %v543_v38, %v543_v38 }
 0x176   : > { %v552_v42 = vadd.f32 %v550_v40, %v540_v32  ;;  %v549_v43 = vmul.f32 %v547_v41, %v543_v38 }
 0x178   : > { %v554_v44 = vmul.f32 0.7978846, %v552_v42  ;;  %v551_v45 = vmul.f32 0.044715, %v549_v43 }
 0x17a   : > { %813 = vtanh.f32 %v554_v44  ;;  %v553_v46 = vadd.f32 %v551_v45, %v543_v38 }
 0x17c   : > { %v555_v47 = vmul.f32 0.7978846, %v553_v46 }
 0x17e   : > { %815 = vtanh.f32 %v555_v47 }
 0x187   : > { %v814_v48 = vpop.eup %813 }
 0x188   : > { %v558_v49 = vadd.f32 1.0, %v814_v48 }
 0x18a   : > { %v560_v50 = vmul.f32 0.5, %v558_v49 }
 0x18b   : > { %v816_v51 = vpop.eup %815 }
 0x18c   : > { %v562_v52 = vmul.f32 %v560_v50, %v540_v32  ;;  %v559_v53 = vadd.f32 1.0, %v816_v51 }
 0x18e   : > { %564 = vst [vmem:[%s380_s13] sm:$0xff] %v562_v52  ;;  %v561_v54 = vmul.f32 0.5, %v559_v53 }
 0x190   : > { %v563_v55 = vmul.f32 %v561_v54, %v543_v38 }
 0x192   : > { %565 = vst [vmem:[%s380_s13 + $0x8] sm:$0xff] %v563_v55 }
 0x193 PF: > { %s16_s25 = sadd.s32 1, %s855_s25   ;;  %s1022_s21 = smov %s847_s23 }
 0x194   : > { %p13_p7 = scmp.ge.s32.totalorder %s16_s25, 6   ;;  %s1023_s22 = smov %s851_s24 }
 0x195   : > { %s1024_s23 = smov %s1027_s26  ;;  %s1025_s24 = smov %s1031_s27 }
 0x196   :  { %15 = sbr.rel (!%p13_p7) target bundleno = 3 (0x3), region = 89 }

</bundles_post_ra>
